<compile_context>
chip_gen: v5e
topology: v5e:2x2
jax: 0.10.0
libtpu: 0.0.40
codegen_flags: <defaults>
</compile_context>

<pallas_src>
import functools
import math

import jax
import jax.numpy as jnp
from jax.experimental import pallas as pl
from jax.experimental.pallas import tpu as pltpu


def _round_up(v, m):
    return (v + m - 1) // m * m


def ffn_kernel(x_ref, w1_ref, b1_ref, w2_ref, b2_ref, gamma_ref, beta_ref,
               o_ref, acc_ref, *, d_model, eps):
    # Grid: (row_tiles, ff_tiles); ff axis (axis 1) is the reduction axis.
    k = pl.program_id(1)

    @pl.when(k == 0)
    def _():
        acc_ref[...] = jnp.zeros_like(acc_ref)

    # linear1 slab + ReLU: bf16 MXU matmul, f32 accumulate, f32 bias/ReLU.
    x_bf16 = x_ref[...].astype(jnp.bfloat16)
    h = jnp.dot(x_bf16, w1_ref[...], preferred_element_type=jnp.float32)
    h = jnp.maximum(h + b1_ref[...], 0.0)

    # linear2 slab, accumulated over the d_ff grid axis in f32.
    acc_ref[...] += jnp.dot(h.astype(jnp.bfloat16), w2_ref[...],
                            preferred_element_type=jnp.float32)

    @pl.when(k == pl.num_programs(1) - 1)
    def _():
        # TODO(synk): dropout omitted (nn.Dropout in eval mode is identity; training-mode
        #             stochastic masking would use pltpu.prng_seed / prng_random_bits).

        # bias + residual (residual kept at the input precision, math in f32)
        y = acc_ref[...] + b2_ref[...] + x_ref[...].astype(jnp.float32)

        # LayerNorm over the REAL d_model (the last dim may be zero-padded to 128*n).
        dp = y.shape[-1]
        inv_d = 1.0 / d_model
        if dp != d_model:
            mask = (jax.lax.broadcasted_iota(jnp.int32, (1, dp), 1) < d_model
                    ).astype(jnp.float32)
            y = y * mask                       # padded columns are already 0; keep exact
            mean = jnp.sum(y, axis=-1, keepdims=True) * inv_d
            centered = (y - mean) * mask
        else:
            mean = jnp.sum(y, axis=-1, keepdims=True) * inv_d
            centered = y - mean
        var = jnp.sum(centered * centered, axis=-1, keepdims=True) * inv_d
        out = centered * jax.lax.rsqrt(var + eps)
        out = out * gamma_ref[...] + beta_ref[...]
        o_ref[...] = out.astype(o_ref.dtype)


def positionwise_ffn(x, w1, b1, w2, b2, gamma, beta, *, tm=256, tf=512, eps=1e-5):
    """x: [batch, seq, d_model] -> [batch, seq, d_model].

    w1: [d_ff, d_model], w2: [d_model, d_ff] (torch nn.Linear layout).
    tm: row tile (tokens per grid step); keep n/tm >= 2 on v7x so both TCs get work.
    tf: d_ff tile (reduction slab); bounds resident weight VMEM.
    """
    batch, seq, d_model = x.shape
    d_ff = w1.shape[0]
    n = batch * seq

    # Lane-dense padding of feature dims to multiples of 128.
    dp = _round_up(d_model, 128)
    fp = _round_up(d_ff, 128)

    # Tile sizes (multiples of 8 / 128, never larger than the padded extents).
    tf = min(_round_up(tf, 128), fp)
    fp = _round_up(fp, tf)
    tm_eff = _round_up(min(tm, _round_up(n, 8)), 8)
    n_pad = _round_up(n, tm_eff)

    # Pad / transpose / cast parameters. Weights in bf16 (halves HBM traffic, feeds the
    # MXU at bf16 rate); biases / LN params stay f32 for the f32 epilogue.
    x2d = jnp.pad(x.reshape(n, d_model), ((0, n_pad - n), (0, dp - d_model)))
    w1t = jnp.pad(w1.T.astype(jnp.bfloat16), ((0, dp - d_model), (0, fp - d_ff)))
    w2t = jnp.pad(w2.T.astype(jnp.bfloat16), ((0, fp - d_ff), (0, dp - d_model)))
    b1p = jnp.pad(b1.astype(jnp.float32), (0, fp - d_ff)).reshape(1, fp)
    b2p = jnp.pad(b2.astype(jnp.float32), (0, dp - d_model)).reshape(1, dp)
    gp = jnp.pad(gamma.astype(jnp.float32), (0, dp - d_model)).reshape(1, dp)
    bp = jnp.pad(beta.astype(jnp.float32), (0, dp - d_model)).reshape(1, dp)

    grid = (n_pad // tm_eff, fp // tf)

    # Scoped VMEM budget: double-buffered tiles + accumulator + intermediate, with headroom.
    x_bytes = x2d.dtype.itemsize
    vmem_bytes = (
        2 * tm_eff * dp * x_bytes                 # x tile (in)
        + 2 * tm_eff * dp * x_bytes               # output tile
        + 2 * (dp * tf + tf * dp) * 2             # W1 / W2 slabs (bf16)
        + 2 * (tf + 3 * dp) * 4                   # b1 slab, b2, gamma, beta
        + tm_eff * dp * 4                         # f32 accumulator scratch
        + 2 * tm_eff * tf * 4                     # intermediate h + slack
    )
    vmem_limit = int(min(max(vmem_bytes * 2, 8 << 20), 64 << 20))

    kernel = functools.partial(ffn_kernel, d_model=d_model, eps=eps)

    out2d = pl.pallas_call(
        kernel,
        out_shape=jax.ShapeDtypeStruct((n_pad, dp), x.dtype),
        grid_spec=pltpu.PrefetchScalarGridSpec(
            num_scalar_prefetch=0,
            grid=grid,
            in_specs=[
                pl.BlockSpec((tm_eff, dp), lambda i, k: (i, 0)),   # x rows
                pl.BlockSpec((dp, tf), lambda i, k: (0, k)),       # W1^T slab
                pl.BlockSpec((1, tf), lambda i, k: (0, k)),        # b1 slab
                pl.BlockSpec((tf, dp), lambda i, k: (k, 0)),       # W2^T slab
                pl.BlockSpec((1, dp), lambda i, k: (0, 0)),        # b2
                pl.BlockSpec((1, dp), lambda i, k: (0, 0)),        # gamma
                pl.BlockSpec((1, dp), lambda i, k: (0, 0)),        # beta
            ],
            out_specs=pl.BlockSpec((tm_eff, dp), lambda i, k: (i, 0)),
            scratch_shapes=[pltpu.VMEM((tm_eff, dp), jnp.float32)],
        ),
        compiler_params=pltpu.CompilerParams(
            dimension_semantics=("parallel", "arbitrary"),
            vmem_limit_bytes=vmem_limit,
        ),
    )(x2d, w1t, b1p, w2t, b2p, gp, bp)

    return out2d[:n, :d_model].reshape(batch, seq, d_model)


def xavier_uniform(key, shape):
    # shape = (fan_out, fan_in) to mirror torch nn.Linear.weight
    fan_out, fan_in = shape
    limit = math.sqrt(6.0 / (fan_in + fan_out))
    return jax.random.uniform(key, shape, jnp.float32, -limit, limit)


if __name__ == "__main__":
    batch, seq, d_model, d_ff = 2, 8, 32, 64

    key = jax.random.PRNGKey(0)
    kx, kw1, kw2 = jax.random.split(key, 3)

    x = jax.random.normal(kx, (batch, seq, d_model), jnp.float32)

    # Deterministic params (mirrors init_weights: xavier weights, zero biases,
    # LayerNorm gamma=1, beta=0).
    w1 = xavier_uniform(kw1, (d_ff, d_model))   # torch layout (out, in)
    b1 = jnp.zeros((d_ff,), jnp.float32)
    w2 = xavier_uniform(kw2, (d_model, d_ff))
    b2 = jnp.zeros((d_model,), jnp.float32)
    gamma = jnp.ones((d_model,), jnp.float32)
    beta = jnp.zeros((d_model,), jnp.float32)

    out = positionwise_ffn(x, w1, b1, w2, b2, gamma, beta)
    out = jax.block_until_ready(out)
    assert out.shape == (batch, seq, d_model)

    # Reference with matching bf16 matmul operands / f32 accumulation & LayerNorm.
    xb = x.reshape(-1, d_model).astype(jnp.bfloat16)
    h_ref = jnp.maximum(
        jnp.dot(xb, w1.T.astype(jnp.bfloat16), preferred_element_type=jnp.float32) + b1,
        0.0)
    y_ref = jnp.dot(h_ref.astype(jnp.bfloat16), w2.T.astype(jnp.bfloat16),
                    preferred_element_type=jnp.float32) + b2
    y_ref = y_ref.reshape(batch, seq, d_model) + x
    mu = y_ref.mean(-1, keepdims=True)
    var = ((y_ref - mu) ** 2).mean(-1, keepdims=True)
    ref = (y_ref - mu) / jnp.sqrt(var + 1e-5) * gamma + beta
    assert jnp.allclose(out, ref, atol=2e-3, rtol=2e-3), float(jnp.max(jnp.abs(out - ref)))

    # Sanity check vs the pure-f32 PyTorch-equivalent reference (looser tolerance
    # because the kernel intentionally uses bf16 matmul operands).
    h32 = jnp.maximum(x @ w1.T + b1, 0.0)
    y32 = h32 @ w2.T + b2 + x
    mu32 = y32.mean(-1, keepdims=True)
    v32 = ((y32 - mu32) ** 2).mean(-1, keepdims=True)
    ref32 = (y32 - mu32) / jnp.sqrt(v32 + 1e-5) * gamma + beta
    assert jnp.allclose(out, ref32, atol=5e-2, rtol=5e-2), float(jnp.max(jnp.abs(out - ref32)))

    print("KERNEL_OK")
</pallas_src>

<mosaic_0001>
module attributes {stable_mosaic.version = 11 : i64} {
  func.func @ffn_kernel(%arg0: i32, %arg1: i32, %arg2: memref<16x128xf32, #tpu.memory_space<vmem>>, %arg3: memref<128x128xbf16, #tpu.memory_space<vmem>>, %arg4: memref<1x128xf32, #tpu.memory_space<vmem>>, %arg5: memref<128x128xbf16, #tpu.memory_space<vmem>>, %arg6: memref<1x128xf32, #tpu.memory_space<vmem>>, %arg7: memref<1x128xf32, #tpu.memory_space<vmem>>, %arg8: memref<1x128xf32, #tpu.memory_space<vmem>>, %arg9: memref<16x128xf32, #tpu.memory_space<vmem>>, %arg10: memref<16x128xf32, #tpu.memory_space<vmem>>) attributes {dimension_semantics = [#tpu.dimension_semantics<parallel>, #tpu.dimension_semantics<arbitrary>], iteration_bounds = array<i64: 1, 1>, scalar_prefetch = 0 : i64, scratch_operands = 1 : i64, tpu.core_type = #tpu.core_type<tc>, window_params = [{transform_indices = @transform_0, window_bounds = array<i64: 16, 128>}, {transform_indices = @transform_1, window_bounds = array<i64: 128, 128>}, {transform_indices = @transform_2, window_bounds = array<i64: 1, 128>}, {transform_indices = @transform_3, window_bounds = array<i64: 128, 128>}, {pipeline_mode = #tpu.pipeline_mode<synchronous>, transform_indices = @transform_4, window_bounds = array<i64: 1, 128>}, {pipeline_mode = #tpu.pipeline_mode<synchronous>, transform_indices = @transform_5, window_bounds = array<i64: 1, 128>}, {pipeline_mode = #tpu.pipeline_mode<synchronous>, transform_indices = @transform_6, window_bounds = array<i64: 1, 128>}, {transform_indices = @transform_7, window_bounds = array<i64: 16, 128>}]} {
    %c0_i32 = arith.constant 0 : i32
    %0 = arith.cmpi eq, %arg1, %c0_i32 : i32
    %1 = arith.extui %0 : i1 to i32
    %c0_i32_0 = arith.constant 0 : i32
    %2 = arith.cmpi ne, %1, %c0_i32_0 : i32
    scf.if %2 {
      %cst_16 = arith.constant 0.000000e+00 : f32
      %21 = vector.broadcast %cst_16 : f32 to vector<16x128xf32>
      %c0_17 = arith.constant 0 : index
      %c0_18 = arith.constant 0 : index
      %22 = vector.load %arg10[%c0_17, %c0_18] : memref<16x128xf32, #tpu.memory_space<vmem>>, vector<16x128xf32>
      tpu.vector_store %arg10[%c0_17, %c0_18], %21 {strides = array<i32>} : memref<16x128xf32, #tpu.memory_space<vmem>>, vector<16x128xf32>,
    } else {
    }
    %c0 = arith.constant 0 : index
    %c0_1 = arith.constant 0 : index
    %3 = vector.load %arg2[%c0, %c0_1] : memref<16x128xf32, #tpu.memory_space<vmem>>, vector<16x128xf32>
    %4 = arith.truncf %3 : vector<16x128xf32> to vector<16x128xbf16>
    %c0_2 = arith.constant 0 : index
    %c0_3 = arith.constant 0 : index
    %5 = vector.load %arg3[%c0_2, %c0_3] : memref<128x128xbf16, #tpu.memory_space<vmem>>, vector<128x128xbf16>
    %cst = arith.constant dense<0.000000e+00> : vector<16x128xf32>
    %6 = tpu.matmul %4, %5, %cst {dimension_numbers = #tpu.dot_dimension_numbers<[1], [0], [0], [1], [0, 0, 1, 1], [], []>} : vector<16x128xbf16>, vector<128x128xbf16>, vector<16x128xf32> -> vector<16x128xf32>
    %c0_4 = arith.constant 0 : index
    %c0_5 = arith.constant 0 : index
    %7 = vector.load %arg4[%c0_4, %c0_5] : memref<1x128xf32, #tpu.memory_space<vmem>>, vector<1x128xf32>
    %8 = vector.broadcast %7 : vector<1x128xf32> to vector<16x128xf32>
    %9 = arith.addf %6, %8 : vector<16x128xf32>
    %cst_6 = arith.constant 0.000000e+00 : f32
    %10 = vector.broadcast %cst_6 : f32 to vector<16x128xf32>
    %11 = arith.maximumf %9, %10 : vector<16x128xf32>
    %c0_7 = arith.constant 0 : index
    %c0_8 = arith.constant 0 : index
    %12 = vector.load %arg10[%c0_7, %c0_8] : memref<16x128xf32, #tpu.memory_space<vmem>>, vector<16x128xf32>
    %13 = arith.truncf %11 : vector<16x128xf32> to vector<16x128xbf16>
    %c0_9 = arith.constant 0 : index
    %c0_10 = arith.constant 0 : index
    %14 = vector.load %arg5[%c0_9, %c0_10] : memref<128x128xbf16, #tpu.memory_space<vmem>>, vector<128x128xbf16>
    %cst_11 = arith.constant dense<0.000000e+00> : vector<16x128xf32>
    %15 = tpu.matmul %13, %14, %cst_11 {dimension_numbers = #tpu.dot_dimension_numbers<[1], [0], [0], [1], [0, 0, 1, 1], [], []>} : vector<16x128xbf16>, vector<128x128xbf16>, vector<16x128xf32> -> vector<16x128xf32>
    %16 = arith.addf %12, %15 : vector<16x128xf32>
    %c0_12 = arith.constant 0 : index
    %c0_13 = arith.constant 0 : index
    %17 = vector.load %arg10[%c0_12, %c0_13] : memref<16x128xf32, #tpu.memory_space<vmem>>, vector<16x128xf32>
    tpu.vector_store %arg10[%c0_12, %c0_13], %16 {strides = array<i32>} : memref<16x128xf32, #tpu.memory_space<vmem>>, vector<16x128xf32>,
    %c0_i32_14 = arith.constant 0 : i32
    %18 = arith.cmpi eq, %arg1, %c0_i32_14 : i32
    %19 = arith.extui %18 : i1 to i32
    %c0_i32_15 = arith.constant 0 : i32
    %20 = arith.cmpi ne, %19, %c0_i32_15 : i32
    scf.if %20 {
      %c0_16 = arith.constant 0 : index
      %c0_17 = arith.constant 0 : index
      %21 = vector.load %arg10[%c0_16, %c0_17] : memref<16x128xf32, #tpu.memory_space<vmem>>, vector<16x128xf32>
      %c0_18 = arith.constant 0 : index
      %c0_19 = arith.constant 0 : index
      %22 = vector.load %arg6[%c0_18, %c0_19] : memref<1x128xf32, #tpu.memory_space<vmem>>, vector<1x128xf32>
      %23 = vector.broadcast %22 : vector<1x128xf32> to vector<16x128xf32>
      %24 = arith.addf %21, %23 : vector<16x128xf32>
      %c0_20 = arith.constant 0 : index
      %c0_21 = arith.constant 0 : index
      %25 = vector.load %arg2[%c0_20, %c0_21] : memref<16x128xf32, #tpu.memory_space<vmem>>, vector<16x128xf32>
      %26 = arith.addf %24, %25 : vector<16x128xf32>
      %27 = tpu.iota {dimensions = array<i32: 1>} : vector<1x128xi32>
      %c32_i32 = arith.constant 32 : i32
      %28 = vector.broadcast %c32_i32 : i32 to vector<1x128xi32>
      %29 = arith.cmpi slt, %27, %28 : vector<1x128xi32>
      %30 = arith.extui %29 : vector<1x128xi1> to vector<1x128xi32>
      %31 = arith.sitofp %30 : vector<1x128xi32> to vector<1x128xf32>
      %32 = vector.broadcast %31 : vector<1x128xf32> to vector<16x128xf32>
      %33 = arith.mulf %26, %32 : vector<16x128xf32>
      %cst_22 = arith.constant dense<0.000000e+00> : vector<16xf32>
      %34 = vector.multi_reduction <add>, %33, %cst_22 [1] : vector<16x128xf32> to vector<16xf32>
      %35 = vector.shape_cast %34 : vector<16xf32> to vector<16x1xf32>
      %cst_23 = arith.constant 3.125000e-02 : f32
      %36 = vector.broadcast %cst_23 : f32 to vector<16x1xf32>
      %37 = arith.mulf %35, %36 : vector<16x1xf32>
      %38 = vector.broadcast %37 : vector<16x1xf32> to vector<16x128xf32>
      %39 = arith.subf %33, %38 : vector<16x128xf32>
      %40 = vector.broadcast %31 : vector<1x128xf32> to vector<16x128xf32>
      %41 = arith.mulf %39, %40 : vector<16x128xf32>
      %42 = arith.mulf %41, %41 : vector<16x128xf32>
      %cst_24 = arith.constant dense<0.000000e+00> : vector<16xf32>
      %43 = vector.multi_reduction <add>, %42, %cst_24 [1] : vector<16x128xf32> to vector<16xf32>
      %44 = vector.shape_cast %43 : vector<16xf32> to vector<16x1xf32>
      %cst_25 = arith.constant 3.125000e-02 : f32
      %45 = vector.broadcast %cst_25 : f32 to vector<16x1xf32>
      %46 = arith.mulf %44, %45 : vector<16x1xf32>
      %cst_26 = arith.constant 9.99999974E-6 : f32
      %47 = vector.broadcast %cst_26 : f32 to vector<16x1xf32>
      %48 = arith.addf %46, %47 : vector<16x1xf32>
      %49 = math.rsqrt %48 : vector<16x1xf32>
      %50 = vector.broadcast %49 : vector<16x1xf32> to vector<16x128xf32>
      %51 = arith.mulf %41, %50 : vector<16x128xf32>
      %c0_27 = arith.constant 0 : index
      %c0_28 = arith.constant 0 : index
      %52 = vector.load %arg7[%c0_27, %c0_28] : memref<1x128xf32, #tpu.memory_space<vmem>>, vector<1x128xf32>
      %53 = vector.broadcast %52 : vector<1x128xf32> to vector<16x128xf32>
      %54 = arith.mulf %51, %53 : vector<16x128xf32>
      %c0_29 = arith.constant 0 : index
      %c0_30 = arith.constant 0 : index
      %55 = vector.load %arg8[%c0_29, %c0_30] : memref<1x128xf32, #tpu.memory_space<vmem>>, vector<1x128xf32>
      %56 = vector.broadcast %55 : vector<1x128xf32> to vector<16x128xf32>
      %57 = arith.addf %54, %56 : vector<16x128xf32>
      %c0_31 = arith.constant 0 : index
      %c0_32 = arith.constant 0 : index
      %58 = vector.load %arg9[%c0_31, %c0_32] : memref<16x128xf32, #tpu.memory_space<vmem>>, vector<16x128xf32>
      tpu.vector_store %arg9[%c0_31, %c0_32], %57 {strides = array<i32>} : memref<16x128xf32, #tpu.memory_space<vmem>>, vector<16x128xf32>,
    } else {
    }
    return
  }
  func.func @transform_0(%arg0: i32, %arg1: i32) -> (i32, i32) {
    %c0_i32 = arith.constant 0 : i32
    %c0_i32_0 = arith.constant 0 : i32
    return %arg0, %c0_i32 : i32, i32
  }
  func.func @transform_1(%arg0: i32, %arg1: i32) -> (i32, i32) {
    %c0_i32 = arith.constant 0 : i32
    %c0_i32_0 = arith.constant 0 : i32
    return %c0_i32, %arg1 : i32, i32
  }
  func.func @transform_2(%arg0: i32, %arg1: i32) -> (i32, i32) {
    %c0_i32 = arith.constant 0 : i32
    %c0_i32_0 = arith.constant 0 : i32
    return %c0_i32, %arg1 : i32, i32
  }
  func.func @transform_3(%arg0: i32, %arg1: i32) -> (i32, i32) {
    %c0_i32 = arith.constant 0 : i32
    %c0_i32_0 = arith.constant 0 : i32
    return %arg1, %c0_i32 : i32, i32
  }
  func.func @transform_4(%arg0: i32, %arg1: i32) -> (i32, i32) {
    %c0_i32 = arith.constant 0 : i32
    %c0_i32_0 = arith.constant 0 : i32
    %c0_i32_1 = arith.constant 0 : i32
    return %c0_i32, %c0_i32_0 : i32, i32
  }
  func.func @transform_5(%arg0: i32, %arg1: i32) -> (i32, i32) {
    %c0_i32 = arith.constant 0 : i32
    %c0_i32_0 = arith.constant 0 : i32
    %c0_i32_1 = arith.constant 0 : i32
    return %c0_i32, %c0_i32_0 : i32, i32
  }
  func.func @transform_6(%arg0: i32, %arg1: i32) -> (i32, i32) {
    %c0_i32 = arith.constant 0 : i32
    %c0_i32_0 = arith.constant 0 : i32
    %c0_i32_1 = arith.constant 0 : i32
    return %c0_i32, %c0_i32_0 : i32, i32
  }
  func.func @transform_7(%arg0: i32, %arg1: i32) -> (i32, i32) {
    %c0_i32 = arith.constant 0 : i32
    %c0_i32_0 = arith.constant 0 : i32
    return %arg0, %c0_i32 : i32, i32
  }
}

</mosaic_0001>

<bundles_post_ra>
// kernel: tpu_custom_call.1
= control target key start
LH: loop header
LB: loop body
LE: loop exit
PB: predicated region body
PF: predicated region fallthrough
CT: control target
= control target key end

     0   :  { %12 = vsyncpa [#allocation4], 0  ;;  %s629_s0 = inlined_call_operand.hbm [shape: f32[16,128], index: 0, kind: input, shape index: {}]   ;;  %s630_s1 = inlined_call_operand.hbm [shape: bf16[128,128], index: 1, kind: input, shape index: {}]   ;;  %s631_s2 = inlined_call_operand.vmem [shape: f32[1,128], index: 2, kind: input, shape index: {}]   ;;  %s632_s3 = inlined_call_operand.hbm [shape: bf16[128,128], index: 3, kind: input, shape index: {}]   ;;  %s633_s4 = inlined_call_operand.vmem [shape: f32[1,128], index: 4, kind: input, shape index: {}]   ;;  %s634_s5 = inlined_call_operand.vmem [shape: f32[1,128], index: 5, kind: input, shape index: {}]   ;;  %s635_s6 = inlined_call_operand.vmem [shape: f32[1,128], index: 6, kind: input, shape index: {}]   ;;  %s636_s7 = inlined_call_operand.hbm [shape: f32[16,128], index: 7, kind: output, shape index: {}]  }
   0x1   :  { %13 = vsyncpa [#allocation7], 0  ;;  %s32_s26 = sshll.u32 %s630_s1, 4  ;;  %s33_s26 = int_to_ptr.hbm [resolvable:$true] %s32_s26 }
   0x2   :  { %14 = vsyncpa [#allocation5], 0  ;;  %s550_s27 = smov [#allocation6]   ;;  %s19_s8 = sshll.u32 %s629_s0, 4  ;;  %s20_s8 = int_to_ptr.hbm [resolvable:$true] %s19_s8 }
   0x3   :  { %s34_s28 = sshll.u32 %s550_s27, 4  ;;  %s551_s9 = smov 64   ;;  %s35_s28 = int_to_ptr.vmem [resolvable:$true] %s34_s28 }
   0x4   :  { %s552_s10 = smov 4   ;;  %s553_s11 = smov [#allocation3]  }
   0x5   :  { %40 = dma.hbm_to_vmem [thread:$0]  %s33_s26, 1024, %s35_s28, [#allocation7], %s551_s9, %s551_s9, %s552_s10  }
   0x6   :  { %s21_s12 = sshll.u32 %s553_s11, 4  ;;  %s554_s13 = smov 128   ;;  %s22_s12 = int_to_ptr.vmem [resolvable:$true] %s21_s12 }
   0x7   :  { %s555_s14 = smov 8   ;;  %s47_s16 = sshll.u32 %s632_s3, 4  ;;  %s48_s16 = int_to_ptr.hbm [resolvable:$true] %s47_s16 }
   0x8   :  { %27 = dma.hbm_to_vmem [thread:$0]  %s20_s8, 256, %s22_s12, [#allocation4], %s554_s13, %s554_s13, %s555_s14  }
   0x9   :  { %s556_s17 = smov [#allocation8]  }
   0xa   :  { %s49_s0 = sshll.u32 %s556_s17, 4  ;;  %s50_s0 = int_to_ptr.vmem [resolvable:$true] %s49_s0 }
   0xb   :  { %55 = dma.hbm_to_vmem [thread:$0]  %s48_s16, 1024, %s50_s0, [#allocation7], %s551_s9, %s551_s9, %s552_s10  }
   0xc   :  { %544 = dma.done.wait [#allocation4], 256  }
   0xd   :  { %545 = vsyncadd [#allocation4], 4294967040 }
   0xe   :  { %546 = dma.done.wait [#allocation7], 2048  }
   0xf   :  { %547 = vsyncadd [#allocation7], 4294965248  ;;  %v422_v0 = vld [vmem:[#allocation6 + $0x38] sm:$0xff]  ;;  %v421_v1 = vld [vmem:[#allocation6 + $0x30] sm:$0xff]  ;;  %v267_v27 = vlaneseq  ;;  %v557_v32 = vmov 0.0   ;;  %s558_s23 = smov [#allocation9]  }
  0x10   :  { %151 = vmatpush.bf16.msra.mxu0 %v422_v0  ;;  %v430_v2 = vld [vmem:[#allocation8 + $0x38] sm:$0xff]  ;;  %v429_v3 = vld [vmem:[#allocation8 + $0x30] sm:$0xff]  ;;  %v420_v4 = vld [vmem:[#allocation6 + $0x28] sm:$0xff]  ;;  %s336_s26 = sshll.u32 %s636_s7, 4  ;;  %s337_s26 = int_to_ptr.hbm [resolvable:$true] %s336_s26 }
  0x11   :  { %234 = vmatpush.bf16.msra.mxu1 %v430_v2  ;;  %v428_v5 = vld [vmem:[#allocation8 + $0x28] sm:$0xff]  ;;  %v419_v6 = vld [vmem:[#allocation6 + $0x20] sm:$0xff]  ;;  %v418_v8 = vld [vmem:[#allocation6 + $0x18] sm:$0xff]  ;;  %v268_v28 = vand.u32 127, %v267_v27 }
  0x12   :  { %v427_v7 = vld [vmem:[#allocation8 + $0x20] sm:$0xff]  ;;  %v417_v9 = vld [vmem:[#allocation6 + $0x10] sm:$0xff]  ;;  %v416_v10 = vld [vmem:[#allocation6 + $0x8] sm:$0xff] }
  0x13   :  { %v415_v11 = vld [vmem:[#allocation6] sm:$0xff]  ;;  %v80_v12 = vld [vmem:[#allocation3] sm:$0xff]  ;;  %v81_v13 = vld [vmem:[#allocation3 + $0x8] sm:$0xff]  ;;  %vm269_vm0 = vcmp.lt.s32.totalorder %v268_v28, 32 }
  0x14   :  { %152 = vmatpush.bf16.msra.mxu0 %v421_v1  ;;  %v82_v14 = vpack.c.bf16 %v81_v13, %v80_v12  ;;  %v426_v15 = vld [vmem:[#allocation8 + $0x18] sm:$0xff]  ;;  %v425_v16 = vld [vmem:[#allocation8 + $0x10] sm:$0xff]  ;;  %v424_v17 = vld [vmem:[#allocation8 + $0x8] sm:$0xff]  ;;  %v414_v33 = vsel %vm269_vm0, 1.0, %v557_v32 }
  0x15   :  { %235 = vmatpush.bf16.msra.mxu1 %v429_v3  ;;  %v423_v18 = vld [vmem:[#allocation8] sm:$0xff]  ;;  %v440_v20 = vld [vmem:[%s631_s2] ss:$0 sm:$0xff] }
  0x16   :  { %v441_v29 = vld [vmem:[%s633_s4] ss:$0 sm:$0xff] }
  0x17   :  { %v442_v0 = vld [vmem:[%s634_s5] ss:$0 sm:$0xff]  ;;  %s334_s5 = sshll.u32 %s558_s23, 4  ;;  %s335_s5 = int_to_ptr.vmem [resolvable:$true] %s334_s5 }
  0x18   :  { %153 = vmatpush.bf16.msra.mxu0 %v420_v4  ;;  %v443_v4 = vld [vmem:[%s635_s6] ss:$0 sm:$0xff] }
  0x19   :  { %236 = vmatpush.bf16.msra.mxu1 %v428_v5 }
  0x1c   :  { %154 = vmatpush.bf16.msra.mxu0 %v419_v6 }
  0x1d   :  { %237 = vmatpush.bf16.msra.mxu1 %v427_v7 }
  0x20   :  { %155 = vmatpush.bf16.msra.mxu0 %v418_v8 }
  0x21   :  { %238 = vmatpush.bf16.msra.mxu1 %v426_v15 }
  0x24   :  { %156 = vmatpush.bf16.msra.mxu0 %v417_v9 }
  0x25   :  { %239 = vmatpush.bf16.msra.mxu1 %v425_v16 }
  0x28   :  { %157 = vmatpush.bf16.msra.mxu0 %v416_v10 }
  0x29   :  { %240 = vmatpush.bf16.msra.mxu1 %v424_v17 }
  0x2c   :  { %158 = vmatpush.bf16.msra.mxu0 %v415_v11 }
  0x2d   :  { %241 = vmatpush.bf16.msra.mxu1 %v423_v18 }
  0x2f   :  { %159 = vmatmul.bf16.vlgmr.msra.gmra.mxu0 %v82_v14 }
  0xac   :  { %v160_v19 = vpop.f32.mrf.mxu0 }
  0xad   :  { %v161_v21 = vadd.f32 %v440_v20, %v160_v19 }
  0xaf   :  { %v165_v24 = vmax.f32 %v161_v21, 0.0 }
  0xb4   :  { %v162_v22 = vpop.f32.mrf.mxu0 }
  0xb5   :  { %v163_v23 = vadd.f32 %v440_v20, %v162_v22 }
  0xb7   :  { %v166_v25 = vmax.f32 %v163_v23, 0.0 }
  0xb9   :  { %v169_v26 = vpack.c.bf16 %v166_v25, %v165_v24 }
  0xbb   :  { %242 = vmatmul.bf16.vlgmr.msra.gmra.mxu1 %v169_v26 }
 0x138   :  { %v243_v30 = vpop.f32.mrf.mxu1 }
 0x139   :  { %v261_v31 = vadd.f32 %v441_v29, %v243_v30 }
 0x13b   :  { %v265_v34 = vadd.f32 %v261_v31, %v80_v12 }
 0x13d   :  { %v272_v35 = vmul.f32 %v414_v33, %v265_v34 }
 0x13f   :  { %274 = vadd.xlane.f32.xlu0 %v272_v35 }
 0x140   :  { %v245_v36 = vpop.f32.mrf.mxu1 }
 0x141   :  { %v262_v37 = vadd.f32 %v441_v29, %v245_v36 }
 0x143   :  { %v266_v38 = vadd.f32 %v262_v37, %v81_v13 }
 0x145   :  { %v273_v39 = vmul.f32 %v414_v33, %v266_v38 }
 0x147   :  { %276 = vadd.xlane.f32.xlu0 %v273_v39 }
 0x1b2   :  { %v275_v40 = vpop.xlane.xlu0 %274 }
 0x1b3   :  { %v278_v41 = vmul.f32 0.03125, %v275_v40 }
 0x1b5   :  { %v280_v42 = vsub.f32 %v272_v35, %v278_v41 }
 0x1b7   :  { %v282_v43 = vmul.f32 %v414_v33, %v280_v42 }
 0x1b9   :  { %v284_v44 = vmul.f32 %v282_v43, %v282_v43 }
 0x1ba   :  { %v277_v45 = vpop.xlane.xlu0 %276 }
 0x1bb   :  { %v279_v46 = vmul.f32 0.03125, %v277_v45  ;;  %286 = vadd.xlane.f32.xlu1 %v284_v44 }
 0x1bd   :  { %v281_v47 = vsub.f32 %v273_v39, %v279_v46 }
 0x1bf   :  { %v283_v48 = vmul.f32 %v414_v33, %v281_v47 }
 0x1c1   :  { %v285_v49 = vmul.f32 %v283_v48, %v283_v48 }
 0x1c3   :  { %288 = vadd.xlane.f32.xlu1 %v285_v49 }
 0x22e   :  { %v287_v50 = vpop.xlane.xlu1 %286 }
 0x22f   :  { %v290_v51 = vmul.f32 0.03125, %v287_v50 }
 0x231   :  { %v292_v52 = vadd.f32 1e-05, %v290_v51 }
 0x233   :  { %444 = vrsqrt.f32 %v292_v52  ;;  %vm300_vm2 = vweird.f32 %v292_v52 }
 0x236   :  { %v289_v53 = vpop.xlane.xlu1 %288 }
 0x237   :  { %v291_v54 = vmul.f32 0.03125, %v289_v53 }
 0x239   :  { %v445_v55 = vpop.eup %444  ;;  %v293_v56 = vadd.f32 1e-05, %v291_v54 }
 0x23a   :  { %v295_v57 = vmul.f32 %v445_v55, %v292_v52  ;;  %vm301_vm1 = vweird.f32 %v445_v55 }
 0x23b   :  { %446 = vrsqrt.f32 %v293_v56  ;;  %vm302_vm3 = vmor %vm300_vm2, %vm301_vm1  ;;  %vm310_vm5 = vweird.f32 %v293_v56 }
 0x23c   :  { %v296_v58 = vmul.f32 %v445_v55, %v295_v57 }
 0x23e   :  { %v297_v59 = vmul.f32 0.5, %v296_v58 }
 0x240   :  { %v298_v60 = vsub.f32 1.5, %v297_v59 }
 0x241   :  { %v447_v61 = vpop.eup %446 }
 0x242   :  { %v299_v62 = vmul.f32 %v445_v55, %v298_v60  ;;  %v305_v63 = vmul.f32 %v447_v61, %v293_v56  ;;  %vm311_vm4 = vweird.f32 %v447_v61 }
 0x243   :  { %vm312_vm6 = vmor %vm310_vm5, %vm311_vm4 }
 0x244   :  { %v303_v1 = vsel %vm302_vm3, %v445_v55, %v299_v62  ;;  %v306_v2 = vmul.f32 %v447_v61, %v305_v63 }
 0x245   :  { %v314_v3 = vmul.f32 %v303_v1, %v282_v43 }
 0x246   :  { %v307_v5 = vmul.f32 0.5, %v306_v2 }
 0x247   :  { %v320_v6 = vmul.f32 %v442_v0, %v314_v3 }
 0x248   :  { %v308_v7 = vsub.f32 1.5, %v307_v5 }
 0x249   :  { %v326_v8 = vadd.f32 %v443_v4, %v320_v6 }
 0x24a   :  { %v309_v9 = vmul.f32 %v447_v61, %v308_v7 }
 0x24b   :  { %328 = vst [vmem:[#allocation9] sm:$0xff] %v326_v8 }
 0x24c   :  { %v313_v10 = vsel %vm312_vm6, %v447_v61, %v309_v9 }
 0x24d   :  { %v315_v11 = vmul.f32 %v313_v10, %v283_v48 }
 0x24f   :  { %v321_v12 = vmul.f32 %v442_v0, %v315_v11 }
 0x251   :  { %v327_v13 = vadd.f32 %v443_v4, %v321_v12 }
 0x253   :  { %329 = vst [vmem:[#allocation9 + $0x8] sm:$0xff] %v327_v13 }
 0x254   :  { %342 = dma.vmem_to_hbm [thread:$0]  %s335_s5, 256, %s337_s26, [#allocation5], %s554_s13, %s554_s13, %s555_s14  }
 0x255   :  { %548 = dma.done.wait [#allocation5], 256  }
 0x256   :  { %549 = vsyncadd [#allocation5], 4294967040 }
 0x257   :  { %347 = vsyncpa [#allocation4], 1 }
 0x258   :  { %348 = vsyncpa [#allocation7], 1 }
 0x259   :  { %349 = vsyncpa [#allocation5], 1 }

</bundles_post_ra>
